<compile_context>
chip_gen: v6e
topology: v6e:2x2x1
jax: 0.10.0
libtpu: 0.0.40
codegen_flags: <defaults>
</compile_context>

<pallas_src>
import math

import jax
import jax.numpy as jnp
import numpy as np
from jax.experimental import pallas as pl
from jax.experimental.pallas import tpu as pltpu


# ---------------------------------------------------------------------------
# Kernels.  Lane axis = N = S*T, flattened sample-outer / time-inner.
#   x_ref : (D, tn)        mu_ref : (1, D, T)      r_ref : (G,) in SMEM
# ---------------------------------------------------------------------------
def _expand_mu(mu_ref, tn):
    """Compact (D, T) mu -> (D, tn) lane pattern (each tile holds whole T rows)."""
    mu_t = mu_ref[0]                               # (D, T)
    reps = tn // mu_ref.shape[2]
    return jnp.tile(mu_t, (1, reps)) if reps > 1 else mu_t


def _bump_f0_kernel(x_ref, mu_ref, r_ref, f0_ref):
    g = pl.program_id(1)
    r = r_ref[g]
    tn = x_ref.shape[1]
    diff = x_ref[...] - _expand_mu(mu_ref, tn)     # (D, tn)
    sq = jnp.sum(diff * diff, axis=0, keepdims=True)
    nrm = jnp.sqrt(sq)                             # matches torch.norm
    t = nrm / r
    inside = t < 1.0
    safe = jnp.where(inside, 1.0 - t * t, 2.0)
    f0_ref[0] = jnp.where(inside, jnp.exp(-1.0 / safe), 0.0)


def _bump_fused_kernel(x_ref, mu_ref, r_ref, f0_ref, f1_ref, f2_ref):
    """Fused f0 + first + second derivative (shared diff / norm / f0)."""
    g = pl.program_id(1)
    r = r_ref[g]
    r2 = r * r
    tn = x_ref.shape[1]

    diff = x_ref[...] - _expand_mu(mu_ref, tn)     # (D, tn)
    sq = jnp.sum(diff * diff, axis=0, keepdims=True)
    nrm = jnp.sqrt(sq)
    nrm2 = nrm * nrm                               # torch.norm(...)**2 (sqrt-then-square)

    # --- f0 (stdbump), recomputed here: exp lands on the idle EUP slot ------
    t = nrm / r
    inside = t < 1.0
    safe = jnp.where(inside, 1.0 - t * t, 2.0)
    f0 = jnp.where(inside, jnp.exp(-1.0 / safe), 0.0)          # (1, tn)
    f0_ref[0] = f0

    # --- first derivative: -2 r^2 (x-mu) / (r^2 - ||x-mu||^2)^2 * f0 --------
    den = r2 - nrm2
    coef1 = (-2.0 * r2) * f0 / (den * den)                     # hoisted over D
    f1_ref[0] = diff * coef1

    # --- second derivative (faithful to the PyTorch source: dxmu uses r) ----
    dxmu = r - nrm2
    d2 = dxmu * dxmu
    d3 = d2 * dxmu
    d4 = d2 * d2
    coef_a = (4.0 * r2) * f0 * (-2.0 / d3 + r2 / d4)           # hoisted over D
    coef_b = (2.0 * r2) / d2 * f0                              # hoisted over D
    f2_ref[0] = diff * diff * coef_a - coef_b


# ---------------------------------------------------------------------------
# Wrappers (layout plumbing + pallas_call)
# ---------------------------------------------------------------------------
_MAX_LANES = 32768          # per-step lane tile cap (footprint ~ (3D+2)*tn*4 B x 2 bufs)
_VMEM_LIMIT = 32 * 1024 * 1024


def _choose_lane_tiling(T, S, max_lanes=_MAX_LANES):
    """Return (samples_per_tile, tn, S_pad); tn covers whole time rows."""
    N = T * S
    if N <= max_lanes:
        return S, N, S                             # single full-lane tile
    # Multi-tile: tn must be a multiple of both 128 (BlockSpec rule) and T
    # (so each tile holds whole copies of the time axis for the mu tile-repeat).
    step = 128 // math.gcd(T, 128)                 # samples/tile must be k*step
    k = max(step, ((max_lanes // T) // step) * step)
    S_pad = ((S + k - 1) // k) * k                 # pad samples to whole tiles
    return k, k * T, S_pad


def _prep_inputs(x, mu):
    # x:  [T, S, D] -> [D, S_pad*T]  (lanes sample-outer, time-inner)
    # mu: [G, T, D] -> [G, D, T]     (compact; repeated over samples in-kernel)
    T, S, D = x.shape
    k, tn, S_pad = _choose_lane_tiling(T, S)
    x_l = jnp.transpose(x, (2, 1, 0))              # (D, S, T)
    if S_pad != S:
        x_l = jnp.pad(x_l, ((0, 0), (0, S_pad - S), (0, 0)))
    x_k = x_l.reshape(D, S_pad * T)
    mu_k = jnp.transpose(mu, (0, 2, 1))            # (G, D, T)
    return x_k, mu_k, tn, S_pad


def _common_specs(D, T, tn):
    in_specs = [
        pl.BlockSpec((D, tn), lambda n, g: (0, n)),          # x: constant over g
        pl.BlockSpec((1, D, T), lambda n, g: (g, 0, 0)),     # mu: compact per gauss
        pl.BlockSpec(memory_space=pltpu.MemorySpace.SMEM),   # r
    ]
    params = pltpu.CompilerParams(
        dimension_semantics=("parallel", "parallel"),
        vmem_limit_bytes=_VMEM_LIMIT)
    return in_specs, params


def bump_f0_pallas(x, mu, r):
    T, S, D = x.shape
    G = mu.shape[0]
    x_k, mu_k, tn, S_pad = _prep_inputs(x, mu)
    Np = S_pad * T
    in_specs, params = _common_specs(D, T, tn)
    f0 = pl.pallas_call(
        _bump_f0_kernel,
        out_shape=jax.ShapeDtypeStruct((G, 1, Np), jnp.float32),
        grid=(Np // tn, G),
        in_specs=in_specs,
        out_specs=pl.BlockSpec((1, 1, tn), lambda n, g: (g, 0, n)),
        compiler_params=params,
    )(x_k, mu_k, r)
    f0 = f0.reshape(G, S_pad, T)[:, :S, :]
    return jnp.transpose(f0, (0, 2, 1))                       # (G, T, S)


def bump_fused_pallas(x, mu, r):
    """One pass over HBM producing (f0, f1, f2)."""
    T, S, D = x.shape
    G = mu.shape[0]
    x_k, mu_k, tn, S_pad = _prep_inputs(x, mu)
    Np = S_pad * T
    in_specs, params = _common_specs(D, T, tn)
    f0, f1, f2 = pl.pallas_call(
        _bump_fused_kernel,
        out_shape=(jax.ShapeDtypeStruct((G, 1, Np), jnp.float32),
                   jax.ShapeDtypeStruct((G, D, Np), jnp.float32),
                   jax.ShapeDtypeStruct((G, D, Np), jnp.float32)),
        grid=(Np // tn, G),
        in_specs=in_specs,
        out_specs=(pl.BlockSpec((1, 1, tn), lambda n, g: (g, 0, n)),
                   pl.BlockSpec((1, D, tn), lambda n, g: (g, 0, n)),
                   pl.BlockSpec((1, D, tn), lambda n, g: (g, 0, n))),
        compiler_params=params,
    )(x_k, mu_k, r)
    f0 = jnp.transpose(f0.reshape(G, S_pad, T)[:, :S, :], (0, 2, 1))
    # Transpose to the PyTorch layout [G, T, S, D]; drop if downstream consumes
    # the kernel-native [G, D, S, T] layout (perf-feedback item).
    f1 = jnp.transpose(f1.reshape(G, D, S_pad, T)[:, :, :S, :], (0, 3, 2, 1))
    f2 = jnp.transpose(f2.reshape(G, D, S_pad, T)[:, :, :S, :], (0, 3, 2, 1))
    return f0, f1, f2


class BumpPallas:
    """JAX/Pallas port of the PyTorch Bump module."""

    def __init__(self, mu, r):
        # mu: [gauss, time, dim], r: [gauss]
        self.mu = jnp.asarray(mu, jnp.float32)
        self.r = jnp.asarray(r, jnp.float32)
        self.bump_num, self.dim = mu.shape[0], mu.shape[-1]
        self.f0 = None          # cached like the PyTorch module
        self._f1 = None
        self._f2 = None

    def __call__(self, x, diff_order=0):
        # TODO(synk): like the PyTorch module, f0/derivatives are cached from the
        # first x and never invalidated if a different x is passed later.
        x = jnp.asarray(x, jnp.float32)
        if diff_order == 0:
            if self.f0 is None:
                self.f0 = bump_f0_pallas(x, self.mu, self.r)
            return self.f0
        elif diff_order in (1, 2):
            if self._f1 is None:
                f0, f1, f2 = bump_fused_pallas(x, self.mu, self.r)
                if self.f0 is None:
                    self.f0 = f0
                self._f1, self._f2 = f1, f2
            return self._f1 if diff_order == 1 else self._f2
        else:
            raise RuntimeError(
                "higher order derivatives of the bump function has not been implemented!"
            )


# ---------------------------------------------------------------------------
# Pure-JAX reference mirroring the PyTorch code exactly (for validation)
# ---------------------------------------------------------------------------
def _ref_forward(x, mu, r, diff_order):
    mu_e = mu[:, :, None, :]                               # [G, T, 1, D]
    diff = x[None] - mu_e                                  # [G, T, S, D]
    nrm = jnp.sqrt(jnp.sum(diff * diff, axis=3))           # [G, T, S]
    t = nrm / r[:, None, None]
    safe = jnp.where(t >= 1.0, 2.0, 1.0 - t * t)
    f0 = jnp.where(t >= 1.0, 0.0, jnp.exp(-1.0 / safe))
    if diff_order == 0:
        return f0
    rr = r[:, None, None, None]
    if diff_order == 1:
        return (-2.0 * rr ** 2 * diff
                / (rr ** 2 - nrm[..., None] ** 2) ** 2 * f0[..., None])
    dxmu = rr - nrm[..., None] ** 2
    return (4.0 * rr ** 2 * diff ** 2 * f0[..., None]
            * (-2.0 / dxmu ** 3 + rr ** 2 / dxmu ** 4)
            - 2.0 * rr ** 2 / dxmu ** 2 * f0[..., None])


if __name__ == "__main__":
    G, T, S, D = 4, 8, 16, 4   # gauss, time, sample, dim  (N = S*T = 128 lanes)

    key = jax.random.PRNGKey(0)
    k_x, k_mu, k_r = jax.random.split(key, 3)
    x = 0.3 * jax.random.normal(k_x, (T, S, D), dtype=jnp.float32)
    mu = 0.3 * jax.random.normal(k_mu, (G, T, D), dtype=jnp.float32)
    r = jax.random.uniform(k_r, (G,), minval=2.0, maxval=3.0, dtype=jnp.float32)

    bump = BumpPallas(mu, r)

    f0 = jax.block_until_ready(bump(x, diff_order=0))
    f1 = jax.block_until_ready(bump(x, diff_order=1))
    f2 = jax.block_until_ready(bump(x, diff_order=2))

    assert f0.shape == (G, T, S)
    assert f1.shape == (G, T, S, D)
    assert f2.shape == (G, T, S, D)

    np.testing.assert_allclose(np.asarray(f0), np.asarray(_ref_forward(x, mu, r, 0)),
                               rtol=1e-5, atol=1e-6)
    np.testing.assert_allclose(np.asarray(f1), np.asarray(_ref_forward(x, mu, r, 1)),
                               rtol=1e-4, atol=1e-5)
    # The (faithfully ported) second-derivative formula has an interior pole at
    # ||x-mu||^2 = r; near it a 1-ulp difference in the norm is amplified by
    # 1/dxmu^4, so equally valid f32 evaluations can differ by ~1e-3 relative.
    np.testing.assert_allclose(np.asarray(f2), np.asarray(_ref_forward(x, mu, r, 2)),
                               rtol=5e-3, atol=1e-4)

    print("KERNEL_OK")
</pallas_src>

<mosaic_0001>
module attributes {stable_mosaic.version = 11 : i64} {
  func.func @_bump_f0_kernel(%arg0: i32, %arg1: i32, %arg2: memref<4x128xf32, #tpu.memory_space<vmem>>, %arg3: memref<1x4x8xf32, #tpu.memory_space<vmem>>, %arg4: memref<4xf32, #tpu.memory_space<smem>>, %arg5: memref<1x1x128xf32, #tpu.memory_space<vmem>>) attributes {dimension_semantics = [#tpu.dimension_semantics<parallel>, #tpu.dimension_semantics<parallel>], iteration_bounds = array<i64: 1, 4>, scalar_prefetch = 0 : i64, scratch_operands = 0 : i64, tpu.core_type = #tpu.core_type<tc>, window_params = [{transform_indices = @transform_0, window_bounds = array<i64: 4, 128>}, {transform_indices = @transform_1, window_bounds = array<i64: 1, 4, 8>}, {transform_indices = @transform_2, window_bounds = array<i64: 4>}, {transform_indices = @transform_3, window_bounds = array<i64: 1, 1, 128>}]} {
    %0 = arith.index_cast %arg1 : i32 to index
    %1 = memref.load %arg4[%0] : memref<4xf32, #tpu.memory_space<smem>>
    %c0 = arith.constant 0 : index
    %c0_0 = arith.constant 0 : index
    %2 = vector.load %arg2[%c0, %c0_0] : memref<4x128xf32, #tpu.memory_space<vmem>>, vector<4x128xf32>
    %c0_1 = arith.constant 0 : index
    %c0_2 = arith.constant 0 : index
    %c0_3 = arith.constant 0 : index
    %3 = vector.load %arg3[%c0_1, %c0_2, %c0_3] : memref<1x4x8xf32, #tpu.memory_space<vmem>>, vector<1x4x8xf32>
    %4 = vector.shape_cast %3 : vector<1x4x8xf32> to vector<4x8xf32>
    %5 = tpu.concatenate %4, %4, %4, %4, %4, %4, %4, %4, %4, %4, %4, %4, %4, %4, %4, %4 in 1 : vector<4x8xf32>, vector<4x8xf32>, vector<4x8xf32>, vector<4x8xf32>, vector<4x8xf32>, vector<4x8xf32>, vector<4x8xf32>, vector<4x8xf32>, vector<4x8xf32>, vector<4x8xf32>, vector<4x8xf32>, vector<4x8xf32>, vector<4x8xf32>, vector<4x8xf32>, vector<4x8xf32>, vector<4x8xf32> -> vector<4x128xf32>
    %6 = arith.subf %2, %5 : vector<4x128xf32>
    %7 = arith.mulf %6, %6 : vector<4x128xf32>
    %cst = arith.constant dense<0.000000e+00> : vector<128xf32>
    %8 = vector.multi_reduction <add>, %7, %cst [0] : vector<4x128xf32> to vector<128xf32>
    %9 = vector.shape_cast %8 : vector<128xf32> to vector<1x128xf32>
    %10 = math.sqrt %9 : vector<1x128xf32>
    %11 = vector.broadcast %1 : f32 to vector<1x128xf32>
    %12 = arith.divf %10, %11 : vector<1x128xf32>
    %cst_4 = arith.constant 1.000000e+00 : f32
    %13 = vector.broadcast %cst_4 : f32 to vector<1x128xf32>
    %14 = arith.cmpf olt, %12, %13 : vector<1x128xf32>
    %15 = arith.mulf %12, %12 : vector<1x128xf32>
    %cst_5 = arith.constant 1.000000e+00 : f32
    %16 = vector.broadcast %cst_5 : f32 to vector<1x128xf32>
    %17 = arith.subf %16, %15 : vector<1x128xf32>
    %cst_6 = arith.constant 2.000000e+00 : f32
    %18 = vector.broadcast %cst_6 : f32 to vector<1x128xf32>
    %19 = arith.select %14, %17, %18 : vector<1x128xi1>, vector<1x128xf32>
    %cst_7 = arith.constant -1.000000e+00 : f32
    %20 = vector.broadcast %cst_7 : f32 to vector<1x128xf32>
    %21 = arith.divf %20, %19 : vector<1x128xf32>
    %22 = math.exp %21 : vector<1x128xf32>
    %cst_8 = arith.constant 0.000000e+00 : f32
    %23 = vector.broadcast %cst_8 : f32 to vector<1x128xf32>
    %24 = arith.select %14, %22, %23 : vector<1x128xi1>, vector<1x128xf32>
    %c0_9 = arith.constant 0 : index
    %c0_10 = arith.constant 0 : index
    %c0_11 = arith.constant 0 : index
    %25 = vector.load %arg5[%c0_9, %c0_10, %c0_11] : memref<1x1x128xf32, #tpu.memory_space<vmem>>, vector<1x1x128xf32>
    %26 = vector.shape_cast %25 : vector<1x1x128xf32> to vector<1x128xf32>
    %27 = vector.shape_cast %24 : vector<1x128xf32> to vector<1x1x128xf32>
    tpu.vector_store %arg5[%c0_9, %c0_10, %c0_11], %27 {strides = array<i32>} : memref<1x1x128xf32, #tpu.memory_space<vmem>>, vector<1x1x128xf32>,
    return
  }
  func.func @transform_0(%arg0: i32, %arg1: i32) -> (i32, i32) {
    %c0_i32 = arith.constant 0 : i32
    %c0_i32_0 = arith.constant 0 : i32
    return %c0_i32, %arg0 : i32, i32
  }
  func.func @transform_1(%arg0: i32, %arg1: i32) -> (i32, i32, i32) {
    %c0_i32 = arith.constant 0 : i32
    %c0_i32_0 = arith.constant 0 : i32
    %c0_i32_1 = arith.constant 0 : i32
    return %arg1, %c0_i32, %c0_i32_0 : i32, i32, i32
  }
  func.func @transform_2(%arg0: i32, %arg1: i32) -> i32 {
    %c0_i32 = arith.constant 0 : i32
    %c0_i32_0 = arith.constant 0 : i32
    return %c0_i32 : i32
  }
  func.func @transform_3(%arg0: i32, %arg1: i32) -> (i32, i32, i32) {
    %c0_i32 = arith.constant 0 : i32
    %c0_i32_0 = arith.constant 0 : i32
    return %arg1, %c0_i32, %arg0 : i32, i32, i32
  }
}

</mosaic_0001>

<bundles_post_ra>
// kernel: tpu_custom_call.1
= control target key start
LH: loop header
LB: loop body
LE: loop exit
PB: predicated region body
PF: predicated region fallthrough
CT: control target
= control target key end

     0   :  { %8 = vsyncpa [#allocation3], 0  ;;  %s960_s0 = inlined_call_operand.hbm [shape: f32[4,128], index: 0, kind: input, shape index: {}]   ;;  %s961_s1 = inlined_call_operand.hbm [shape: f32[4,4,8], index: 1, kind: input, shape index: {}]   ;;  %s962_s2 = inlined_call_operand.vmem [shape: f32[4], index: 2, kind: input, shape index: {}]   ;;  %s963_s3 = inlined_call_operand.hbm [shape: f32[4,1,128], index: 3, kind: output, shape index: {}]  }
   0x1   :  { %9 = vsyncpa [#allocation7], 0 }
   0x2   :  { %11 = vsyncpa [#allocation7 + $0x1], 0 }
   0x3   :  { %12 = vsyncpa [#allocation5], 0 }
   0x4   :  { %13 = vsyncpa [#allocation4], 0 }
   0x5   :  { %15 = vsyncpa [#allocation4 + $0x1], 0  ;;  %s776_s12 = smov 0   ;;  %s778_s13 = smov 0  }
   0x6   :  { %s780_s14 = smov 0   ;;  %s782_s15 = smov 0  }
   0x7   :  { %s784_s16 = smov 0   ;;  %s786_s17 = smov 0  }
   0x8 LB: > { %s457_s18 = sadd.s32 4294967295, %s735_s17   ;;  %s458_s19 = sadd.s32 4294967294, %s735_s17   ;;  %s735_s17 = sphi %s786_s17, %s21_s17   ;;  %s731_s16 = sphi %s784_s16, %s985_s16   ;;  %s727_s15 = sphi %s782_s15, %s984_s15   ;;  %s723_s14 = sphi %s780_s14, %s983_s14   ;;  %s719_s13 = sphi %s778_s13, %s982_s13   ;;  %s715_s12 = sphi %s776_s12, %s981_s12  }
   0x9   : > { %p79_p0 = scmp.ne.s32.totalorder %s719_s13, %s715_s12  ;;  %p810_p1 = scmp.eq.s32.totalorder %s457_s18, 0 }
   0xa   : > { %p814_p2 = scmp.eq.s32.totalorder %s457_s18, 3  ;;  %p132_p3 = scmp.eq.s32.totalorder %s458_s19, 3 }
   0xb   : > { %s968_s20 = scalar_select %p810_p1, 1, 0 }
   0xc   : > { %s969_s21 = scalar_select %p814_p2, 1, 0 }
   0xd   : > { %p820_p4 = por %p810_p1, %p79_p0  ;;  %p459_p5 = scmp.ge.s32.totalorder %s735_s17, 1 }
   0xe   : > { %p825_p6 = por %p132_p3, %p79_p0  ;;  %p139_p7 = scmp.lt.s32.totalorder %s735_s17, 5 }
   0xf   : > { %s970_s22 = scalar_select %p820_p4, 1, 0 }
  0x10   : > { %s971_s23 = scalar_select %p825_p6, 1, 0 }
  0x11   : > { %p830_p8 = pnand %p459_p5, %p139_p7  ;;  %s737_s25 = smov [#allocation2]  }
  0x12   : > { %s154_s26 = sshll.u32 %s737_s25, 4  ;;  %s165_s29 = sshll.u32 %s962_s2, 4  ;;  %s155_s26 = int_to_ptr.vmem [resolvable:$true] %s154_s26  ;;  %s166_s29 = int_to_ptr.vmem [resolvable:$true] %s165_s29 }
  0x13   : > { %s972_s24 = scalar_select %p830_p8, 1, 0 }
  0x14   : > { %p484_p9 = pneg %p830_p8  ;;  %s589_s4 = scalar_lea.vmem %s155_s26, 64 }
  0x15   : > { %p590_p12 = scmp.ne.s32.totalorder %s155_s26, %s589_s4  ;;  %p597_p3 = scmp.lt.s32.totalorder %s155_s26, %s155_s26 }
  0x16   : > { %p841_p10 = pnand %p484_p9, %p810_p1  ;;  %p598_p5 = scmp.lt.s32.totalorder %s589_s4, %s589_s4 }
  0x18   : > { %p580_p11 = pneg %p841_p10  ;;  %p599_p7 = por %p598_p5, %p597_p3 }
  0x1a   : > { %p592_p13 = pnand %p590_p12, %p580_p11 }
  0x1c   : > { %p593_p0 = pneg %p592_p13 }
  0x1e   : > { %p600_p6 = pnand %p599_p7, %p593_p0 }
  0x20   : > { %603 = shalt.err (!%p600_p6)
}
  0x21   : > { %487 = dma.hbm_to_vmem [thread:$0]  (!%p841_p10), %s960_s0, 64, %s155_s26, [#allocation3]  }
  0x22   : > { %s604_s7 = scalar_lea.vmem %s166_s29, 16  ;;  %p612_p12 = scmp.lt.s32.totalorder %s166_s29, %s166_s29 }
  0x23   : > { %p605_p9 = scmp.ne.s32.totalorder %s166_s29, %s604_s7  ;;  %p613_p13 = scmp.lt.s32.totalorder %s604_s7, %s604_s7 }
  0x25   : > { %p607_p4 = pnand %p605_p9, %p580_p11  ;;  %p614_p8 = por %p613_p13, %p612_p12 }
  0x27   : > { %p608_p1 = pneg %p607_p4 }
  0x29   : > { %p615_p2 = pnand %p614_p8, %p608_p1 }
  0x2b   : > { %618 = shalt.err (!%p615_p2)
}
  0x2c   : > { %s738_s8 = smov [#allocation8]   ;;  %s30_s9 = sadd.s32 1, %s731_s16 }
  0x2d   : > { %490 = dma.vmem_to_smem (!%p841_p10), %s166_s29, 16, %s738_s8, [#allocation5]  }
  0x2e   : > { %s66_s10 = sadd.s32 1, %s723_s14  ;;  %p31_p4 = scmp.ge.s32.totalorder %s30_s9, 4 }
  0x2f   : > { %p73_p1 = scmp.ne.s32.totalorder %s723_s14, %s719_s13  ;;  %p74_p2 = scmp.eq.s32.totalorder %s735_s17, 0 }
  0x30   : > { %p501_p6 = scmp.lt.s32.totalorder %s735_s17, 4  ;;  %s987_s9 = smov (%p31_p4, %s30_s9), 0 }
  0x31   : > { %p75_p8 = por %p74_p2, %p73_p1  ;;  %p974_p11 = scmp.ne.s32.totalorder %s969_s21, 0 }
  0x32   : > { %s63_s18 = ssub.s32 %s731_s16, %s987_s9  ;;  %s176_s19 = sand.u32 1, %s723_s14  }
  0x33   : > { %p870_p0 = por %p974_p11, %p73_p1  ;;  %p64_p3 = scmp.eq.s32.totalorder %s63_s18, 0 }
  0x34   : > { %s463_s25 = sshll.u32 %s176_s19, 2  ;;  %s464_s26 = sshll.u32 %s731_s16, 6 }
  0x35   : > { %s879_s27 = scalar_select %p64_p3, %s723_s14, %s66_s10  }
  0x36   : > { %s185_s30 = scalar_lea.hbm %s961_s1, %s464_s26  ;;  %s180_s4 = scalar_lea.vmem [#allocation6], %s463_s25 }
  0x37   : > { %s187_s5 = sshll.u32 %s180_s4, 4  ;;  %p886_p10 = pnand %p501_p6, %p75_p8  ;;  %s188_s5 = int_to_ptr.vmem [resolvable:$true] %s187_s5 }
  0x38   : > { %s177_s6 = scalar_lea.sflag [#allocation7], %s176_s19  ;;  %s632_s7 = scalar_lea.vmem %s188_s5, 64 }
  0x39   : > { %p621_p5 = pneg %p886_p10  ;;  %p633_p7 = scmp.ne.s32.totalorder %s188_s5, %s632_s7 }
  0x3a   : > { %s739_s8 = smov [#allocation6]  }
  0x3b   : > { %p635_p9 = pnand %p633_p7, %p621_p5  ;;  %s637_s10 = sshll.u32 %s739_s8, 4  ;;  %s638_s10 = int_to_ptr.vmem [resolvable:$false] %s637_s10 }
  0x3c   : > { %s639_s18 = scalar_lea.vmem %s638_s10, 128  ;;  %p640_p13 = scmp.lt.s32.totalorder %s188_s5, %s638_s10 }
  0x3d   : > { %p636_p12 = pneg %p635_p9  ;;  %p641_p4 = scmp.lt.s32.totalorder %s639_s18, %s632_s7 }
  0x3f   : > { %p642_p1 = por %p641_p4, %p640_p13 }
  0x41   : > { %p643_p2 = pnand %p642_p1, %p636_p12 }
  0x43   : > { %646 = shalt.err (!%p643_p2)
}
  0x44   : > { %494 = dma.hbm_to_vmem [thread:$0]  (!%p886_p10), %s185_s30, 64, %s188_s5, %s177_s6  }
  0x45   : > { %p977_p6 = scmp.ne.s32.totalorder %s972_s24, 0 }
  0x46   : > { %p978_p8 = scmp.ne.s32.totalorder (!%p977_p6), %s968_s20, 0 }
  0x47   : > { %196 = sbr.rel (%p977_p6) target bundleno = 318 (0x13e), region = 32 }
  0x4c   : > { %698 = dma.done.wait (%p978_p8), [#allocation3], 64  }
  0x4d   : > { %700 = vsyncadd (%p978_p8), [#allocation3], 4294967232  ;;  %s901_s19 = sand.u32 1, %s719_s13   ;;  %p979_p11 = scmp.ne.s32.totalorder %s970_s22, 0 }
  0x4e   : > { %s467_s25 = sshll.u32 %s901_s19, 2  ;;  %s203_s26 = scalar_lea.sflag [#allocation7], %s901_s19 }
  0x4f   : > { %s206_s28 = scalar_lea.vmem [#allocation6], %s467_s25 }
  0x50   : > { %702 = dma.done.wait (%p979_p11), %s203_s26, 64  }
  0x51   : > { %704 = vsyncadd (%p979_p11), %s203_s26, 4294967232 }
  0x52   : > { %706 = dma.done.wait (%p978_p8), [#allocation5], 16  }
  0x53   : > { %708 = vsyncadd (%p978_p8), [#allocation5], 4294967280 }
  0x54   : > { %215 = sfence }
  0x55   : > { %v235_v0 = vld [vmem:[%s206_s28] sm:$0xf]  ;;  %s740_s24 = smov 8   ;;  %s741_s29 = smov 24   ;;  %vm282_vm0 = vcmask 64512   ;;  %vm284_vm1 = vcmask 130048  }
  0x56   : > { %237 = vrot.lane.b32.xlu0 %v235_v0, %s740_s24  ;;  %243 = vrot.lane.b32.xlu1 %v235_v0, %s741_s29  ;;  %s742_s30 = smov 16   ;;  %s743_s4 = smov 32   ;;  %vm286_vm2 = vcmask 195584   ;;  %vm288_vm3 = vcmask 261120   ;;  %vm290_vm4 = vcmask 326656   ;;  %vm292_vm5 = vcmask 392192  }
  0x57   : > { %s744_s5 = smov 40   ;;  %s745_s22 = smov 48   ;;  %vm294_vm6 = vcmask 457728   ;;  %vm296_vm7 = vcmask 523264   ;;  %vm298_vm8 = vcmask 588800   ;;  %vm300_vm9 = vcmask 654336  }
  0x58   : > { %s746_s21 = smov 56   ;;  %s747_s6 = smov 64   ;;  %vm302_vm10 = vcmask 719872   ;;  %vm304_vm11 = vcmask 785408   ;;  %vm306_vm12 = vcmask 850944   ;;  %vm308_vm13 = vcmask 916480  }
  0x59   : > { %s748_s20 = smov 72   ;;  %s749_s7 = smov 80   ;;  %vm310_vm14 = vcmask 982016   ;;  %v234_v28 = vld [vmem:[#allocation2] sm:$0xf]  ;;  %vm314_vm15 = vcmask 1043456  }
  0x5a   : > { %240 = vrot.lane.b32.xlu0 %v235_v0, %s742_s30  ;;  %246 = vrot.lane.b32.xlu1 %v235_v0, %s743_s4  ;;  %s750_s8 = smov 88   ;;  %s751_s10 = smov 96  }
  0x5b   : > { %s752_s18 = smov 104   ;;  %s753_s25 = smov 112  }
  0x5c   : > { %s754_s26 = smov 120   ;;  %s233_s28 = sld [smem:[#allocation8 + %s727_s15]] }
  0x5d   : > { %s469_s24 = sshll.u32 %s727_s15, 4  ;;  %s232_s29 = scalar_lea.vmem [#allocation9], %s901_s19 }
  0x5e   : > { %249 = vrot.lane.b32.xlu0 %v235_v0, %s744_s5  ;;  %252 = vrot.lane.b32.xlu1 %v235_v0, %s745_s22  ;;  %s356_s30 = sshll.u32 %s232_s29, 4  ;;  %s919_s22 = scalar_lea.hbm %s963_s3, %s469_s24  ;;  %s357_s30 = int_to_ptr.vmem [resolvable:$true] %s356_s30 }
  0x62   : > { %255 = vrot.lane.b32.xlu0 %v235_v0, %s746_s21  ;;  %258 = vrot.lane.b32.xlu1 %v235_v0, %s747_s6  ;;  %v329_v41 = vstv %s233_s28  ;;  %s343_s21 = scalar_lea.sflag [#allocation4], %s901_s19  ;;  %s647_s6 = scalar_lea.vmem %s357_s30, 16 }
  0x63   : > { %p648_p3 = scmp.ne.s32.totalorder %s357_s30, %s647_s6 }
  0x65   : > { %p649_p10 = pnand %p648_p3, %p870_p0 }
  0x66   : > { %261 = vrot.lane.b32.xlu0 %v235_v0, %s748_s20  ;;  %264 = vrot.lane.b32.xlu1 %v235_v0, %s749_s7  ;;  %s755_s20 = smov [#allocation9]  }
  0x67   : > { %p650_p5 = pneg %p649_p10  ;;  %s651_s7 = sshll.u32 %s755_s20, 4  ;;  %s652_s7 = int_to_ptr.vmem [resolvable:$false] %s651_s7 }
  0x68   : > { %s653_s15 = scalar_lea.vmem %s652_s7, 32  ;;  %p654_p7 = scmp.lt.s32.totalorder %s357_s30, %s652_s7 }
  0x69   : > { %p655_p9 = scmp.lt.s32.totalorder %s653_s15, %s647_s6 }
  0x6a   : > { %267 = vrot.lane.b32.xlu0 %v235_v0, %s750_s8  ;;  %270 = vrot.lane.b32.xlu1 %v235_v0, %s751_s10 }
  0x6b   : > { %p656_p12 = por %p655_p9, %p654_p7 }
  0x6d   : > { %p657_p13 = pnand %p656_p12, %p650_p5 }
  0x6e   : > { %273 = vrot.lane.b32.xlu0 %v235_v0, %s752_s18  ;;  %276 = vrot.lane.b32.xlu1 %v235_v0, %s753_s25 }
  0x72   : > { %279 = vrot.lane.b32.xlu0 %v235_v0, %s754_s26 }
  0xc8   : > { %v238_v1 = vpop.permute.xlu0 %237  ;;  %v244_v2 = vpop.permute.xlu1 %243 }
  0xc9   : > { %v283_v3 = vsel %vm282_vm0, %v235_v0, %v238_v1 }
  0xcc   : > { %v241_v4 = vpop.permute.xlu0 %240  ;;  %v247_v5 = vpop.permute.xlu1 %246 }
  0xcd   : > { %v285_v6 = vsel %vm284_vm1, %v283_v3, %v241_v4 }
  0xce   : > { %v287_v7 = vsel %vm286_vm2, %v285_v6, %v244_v2 }
  0xcf   : > { %v289_v8 = vsel %vm288_vm3, %v287_v7, %v247_v5 }
  0xd0   : > { %v250_v9 = vpop.permute.xlu0 %249  ;;  %v253_v10 = vpop.permute.xlu1 %252 }
  0xd1   : > { %v291_v11 = vsel %vm290_vm4, %v289_v8, %v250_v9 }
  0xd2   : > { %v293_v12 = vsel %vm292_vm5, %v291_v11, %v253_v10 }
  0xd4   : > { %v256_v13 = vpop.permute.xlu0 %255  ;;  %v259_v14 = vpop.permute.xlu1 %258 }
  0xd5   : > { %v295_v15 = vsel %vm294_vm6, %v293_v12, %v256_v13 }
  0xd6   : > { %v297_v16 = vsel %vm296_vm7, %v295_v15, %v259_v14 }
  0xd8   : > { %v262_v17 = vpop.permute.xlu0 %261  ;;  %v265_v18 = vpop.permute.xlu1 %264 }
  0xd9   : > { %v299_v19 = vsel %vm298_vm8, %v297_v16, %v262_v17 }
  0xda   : > { %v301_v20 = vsel %vm300_vm9, %v299_v19, %v265_v18 }
  0xdc   : > { %v268_v21 = vpop.permute.xlu0 %267  ;;  %v271_v22 = vpop.permute.xlu1 %270 }
  0xdd   : > { %v303_v23 = vsel %vm302_vm10, %v301_v20, %v268_v21 }
  0xde   : > { %v305_v24 = vsel %vm304_vm11, %v303_v23, %v271_v22 }
  0xe0   : > { %v274_v25 = vpop.permute.xlu0 %273  ;;  %v277_v27 = vpop.permute.xlu1 %276 }
  0xe1   : > { %v307_v26 = vsel %vm306_vm12, %v305_v24, %v274_v25 }
  0xe2   : > { %v309_v29 = vsel %vm308_vm13, %v307_v26, %v277_v27 }
  0xe4   : > { %v280_v30 = vpop.permute.xlu0 %279 }
  0xe5   : > { %v311_v31 = vsel %vm310_vm14, %v309_v29, %v280_v30 }
  0xe6   : > { %v312_v32 = vsub.f32 %v234_v28, %v311_v31 }
  0xe8   : > { %v313_v33 = vmul.f32 %v312_v32, %v312_v32 }
  0xea   : > { %v315_v34 = vsel %vm314_vm15, %v313_v33, 0.0 }
  0xeb   : > { %v316_v35 = vrot.slane %v315_v34, 4 }
  0xed   : > { %v317_v36 = vadd.f32 %v316_v35, %v315_v34 }
  0xef   : > { %v318_v37 = vrot.slane %v317_v36, 2 }
  0xf1   : > { %v319_v38 = vadd.f32 %v318_v37, %v317_v36 }
  0xf3   : > { %v320_v39 = vrot.slane %v319_v38, 1 }
  0xf5   : > { %v321_v40 = vadd.f32 %v320_v39, %v319_v38 }
  0xf7   : > { %570 = vrsqrt.f32 %v321_v40  ;;  %vm324_vm0 = vcmp.eq.f32.partialorder %v321_v40, inf  ;;  %v327_v45 = vand.u32 2147483648, %v321_v40  ;;  %vm326_vm1 = vcmp.eq.f32.partialorder %v321_v40, 0.0 }
  0xf8   : > { %572 = vrcp.f32 %v329_v41 }
 0x104   : > { %v571_v42 = vpop.eup %570 }
 0x105   : > { %v323_v43 = vmul.f32 %v571_v42, %v321_v40  ;;  %v573_v44 = vpop.eup %572 }
 0x107   : > { %v325_v46 = vsel %vm324_vm0, %v321_v40, %v323_v43 }
 0x108   : > { %v328_v47 = vsel %vm326_vm1, %v327_v45, %v325_v46 }
 0x109   : > { %v331_v48 = vmul.f32 %v573_v44, %v328_v47 }
 0x10b   : > { %v333_v49 = vmul.f32 %v331_v48, %v331_v48  ;;  %vm332_vm2 = vcmp.lt.f32.partialorder %v331_v48, 1.0 }
 0x10d   : > { %v334_v50 = vsub.f32 1.0, %v333_v49 }
 0x10f   : > { %v335_v51 = vsel %vm332_vm2, %v334_v50, 2.0 }
 0x110   : > { %574 = vrcp.f32 %v335_v51 }
 0x11d   : > { %v575_v52 = vpop.eup %574 }
 0x11e   : > { %v337_v53 = vmul.f32 -1.0, %v575_v52 }
 0x120   : > { %v338_v54 = vmul.f32 1.442695, %v337_v53 }
 0x122   : > { %576 = vpow2.f32 %v338_v54 }
 0x12f   : > { %v577_v55 = vpop.eup %576 }
 0x130   : > { %v340_v56 = vsel %vm332_vm2, %v577_v55, 0.0 }
 0x131   : > { %341 = vst [vmem:[%s232_s29] sm:$0x1] %v340_v56 }
 0x132   : > { %660 = shalt.err (!%p657_p13)
}
 0x133   : > { %s661_s8 = scalar_lea.hbm %s919_s22, 16  ;;  %s665_s18 = scalar_lea.hbm %s963_s3, 64 }
 0x134   : > { %p662_p4 = scmp.ne.s32.totalorder %s919_s22, %s661_s8  ;;  %p666_p6 = scmp.lt.s32.totalorder %s919_s22, %s963_s3 }
 0x135   : > { %p667_p8 = scmp.lt.s32.totalorder %s665_s18, %s661_s8 }
 0x136   : > { %p663_p1 = pnand %p662_p4, %p870_p0 }
 0x137   : > { %p668_p11 = por %p667_p8, %p666_p6 }
 0x138   : > { %p664_p2 = pneg %p663_p1 }
 0x13a   : > { %p669_p3 = pnand %p668_p11, %p664_p2 }
 0x13c   : > { %672 = shalt.err (!%p669_p3)
}
 0x13d   : > { %482 = dma.vmem_to_hbm [thread:$0]  (%p870_p0), %s357_s30, 16, %s919_s22, %s343_s21  }
 0x13e PF: > { %p504_p10 = scmp.ge.s32.totalorder %s735_s17, 2  ;;  %s368_s28 = sand.u32 1, %s715_s12  }
 0x13f   : > { %p980_p5 = scmp.ne.s32.totalorder %s971_s23, 0  ;;  %s369_s24 = scalar_lea.sflag [#allocation4], %s368_s28 }
 0x141   : > { %p496_p7 = pnand %p504_p10, %p980_p5 }
 0x143   : > { %p497_p9 = pneg %p496_p7 }
 0x145   : > { %710 = dma.done.wait (%p497_p9), %s369_s24, 16  }
 0x146   : > { %712 = vsyncadd (%p497_p9), %s369_s24, 4294967280  ;;  %s21_s17 = sadd.s32 1, %s735_s17   ;;  %s981_s12 = smov %s719_s13 }
 0x147   : > { %p18_p12 = scmp.ge.s32.totalorder %s21_s17, 6   ;;  %s982_s13 = smov %s723_s14 }
 0x148   : > { %s983_s14 = smov %s879_s27  ;;  %s984_s15 = smov %s731_s16 }
 0x149   : > { %s985_s16 = smov %s987_s9  ;;  %20 = sbr.rel (!%p18_p12) target bundleno = 8 (0x8), region = 88 }
 0x14e   :  { %373 = vsyncpa [#allocation3], 1 }
 0x14f   :  { %375 = vsyncpa [#allocation3 + $0x1], 1 }
 0x150   :  { %376 = vsyncpa [#allocation7], 1 }
 0x151   :  { %378 = vsyncpa [#allocation7 + $0x1], 1 }
 0x152   :  { %379 = vsyncpa [#allocation4], 1 }
 0x153   :  { %381 = vsyncpa [#allocation4 + $0x1], 1 }
 0x154   :  { %382 = vsyncpa [#allocation5], 1 }
 0x155   :  { %384 = vsyncpa [#allocation5 + $0x1], 1 }

</bundles_post_ra>
